<compile_context>
chip_gen: v6e
topology: v6e:2x2x1
jax: 0.10.0
libtpu: 0.0.40
codegen_flags: <defaults>
</compile_context>

<pallas_src>
import functools
import math

import jax
import jax.numpy as jnp
import numpy as np
from jax.experimental import pallas as pl
from jax.experimental.pallas import tpu as pltpu


def _round_up(x, m):
    return ((x + m - 1) // m) * m


def linear_kernel(x_ref, w_ref, b_ref, o_ref, *, apply_relu):
    # h = X @ W^T + b  (row tile of nodes). Tiny K; f32 compute, cast on store.
    h = jnp.dot(x_ref[...], w_ref[...], preferred_element_type=jnp.float32)
    h = h + b_ref[...]
    if apply_relu:  # only used when depth == 0
        h = jnp.maximum(h, 0.0)
    o_ref[...] = h.astype(o_ref.dtype)


def hop_kernel(a_ref, h_ref, o_ref, acc_ref, *, apply_relu):
    # One normalized-adjacency hop: O[i_block] = sum_k Ahat[i_block, k_block] @ H[k_block].
    @pl.when(pl.program_id(1) == 0)
    def _():
        acc_ref[...] = jnp.zeros_like(acc_ref)

    acc_ref[...] += jnp.dot(a_ref[...], h_ref[...],
                            preferred_element_type=jnp.float32)

    @pl.when(pl.program_id(1) == pl.num_programs(1) - 1)
    def _():
        out = acc_ref[...]
        if apply_relu:
            out = jnp.maximum(out, 0.0)
        o_ref[...] = out.astype(o_ref.dtype)


def gcn_forward(x, w, b, adj, *, depth, tm=256, tk=512):
    """x: [N, in], w: [out, in], b: [out], adj: [N, N] (adj[i,j]=1 iff edge j->i).
    Returns relu(Ahat^depth @ (x @ w.T + b)) with Ahat = (I + adj)/(deg+1)."""
    n, in_size = x.shape
    out_size = w.shape[0]

    # ---- padding: lane-dense output (multiple of 128), node dim multiple of tiles ----
    out_pad = _round_up(out_size, 128)
    in_pad = _round_up(in_size, 8)
    n_pad = _round_up(n, 128)
    tm = min(tm, n_pad)
    tk = min(tk, n_pad)
    n_pad = _round_up(n_pad, math.lcm(tm, tk))

    # ---- fold degree normalization into the adjacency (wrapper-side, exact algebra) ----
    deg = jnp.sum(adj, axis=1, keepdims=True)                       # [N, 1]
    ahat = (jnp.eye(n, dtype=jnp.float32) + adj) / (deg + 1.0)      # [N, N]
    ahat_p = jnp.pad(ahat, ((0, n_pad - n), (0, n_pad - n))).astype(jnp.bfloat16)

    x_p = jnp.pad(x, ((0, n_pad - n), (0, in_pad - in_size)))
    w_t_p = jnp.pad(w.T, ((0, in_pad - in_size), (0, out_pad - out_size)))
    b_p = jnp.pad(b.reshape(1, -1), ((0, 0), (0, out_pad - out_size)))

    # ---- Linear: h0 = X @ W^T + b (row-tiled; negligible compute, K is tiny) ----
    h_dtype = jnp.bfloat16 if depth > 0 else jnp.float32
    h = pl.pallas_call(
        functools.partial(linear_kernel, apply_relu=(depth == 0)),
        out_shape=jax.ShapeDtypeStruct((n_pad, out_pad), h_dtype),
        grid_spec=pltpu.PrefetchScalarGridSpec(
            num_scalar_prefetch=0,
            grid=(n_pad // tm,),
            in_specs=[
                pl.BlockSpec((tm, in_pad), lambda i: (i, 0)),
                pl.BlockSpec((in_pad, out_pad), lambda i: (0, 0)),
                pl.BlockSpec((1, out_pad), lambda i: (0, 0)),
            ],
            out_specs=pl.BlockSpec((tm, out_pad), lambda i: (i, 0)),
        ),
        compiler_params=pltpu.CompilerParams(dimension_semantics=("parallel",)),
    )(x_p, w_t_p, b_p)

    # ---- depth hops: h <- Ahat @ h  (tiled matmul, acc scratch, ReLU fused on last) ----
    hop_cost = pl.CostEstimate(
        flops=2 * n_pad * n_pad * out_pad,
        transcendentals=0,
        bytes_accessed=n_pad * n_pad * 2
        + (n_pad // tm) * n_pad * out_pad * 2
        + n_pad * out_pad * 4,
    )
    for d in range(depth):
        last = d == depth - 1
        h = pl.pallas_call(
            functools.partial(hop_kernel, apply_relu=last),
            out_shape=jax.ShapeDtypeStruct(
                (n_pad, out_pad), jnp.float32 if last else jnp.bfloat16
            ),
            grid_spec=pltpu.PrefetchScalarGridSpec(
                num_scalar_prefetch=0,
                grid=(n_pad // tm, n_pad // tk),
                in_specs=[
                    pl.BlockSpec((tm, tk), lambda i, k: (i, k)),
                    pl.BlockSpec((tk, out_pad), lambda i, k: (k, 0)),
                ],
                out_specs=pl.BlockSpec((tm, out_pad), lambda i, k: (i, 0)),
                scratch_shapes=[pltpu.VMEM((tm, out_pad), jnp.float32)],
            ),
            compiler_params=pltpu.CompilerParams(
                dimension_semantics=("parallel", "arbitrary")
            ),
            cost_estimate=hop_cost,
        )(ahat_p, h)

    # ---- drop padding ----
    return h[:n, :out_size]


def reference_forward(x, w, b, adj, *, depth):
    h = x @ w.T + b.reshape(1, -1)
    deg = jnp.sum(adj, axis=1, keepdims=True)
    invdeg = 1.0 / (deg + 1.0)
    for _ in range(depth):
        h = (h + adj @ h) * invdeg
    return jnp.maximum(h, 0.0)


if __name__ == "__main__":
    key = jax.random.PRNGKey(0)
    N = 16          # number of graph nodes
    in_size = 4
    out_size = 32
    depth = 2

    k_x, k_w, k_b = jax.random.split(key, 3)

    # Node features.
    x = jax.random.normal(k_x, (N, in_size), dtype=jnp.float32)

    # nn.Linear(in_size, out_size) parameters (PyTorch-style uniform init).
    bound = 1.0 / np.sqrt(in_size)
    w = jax.random.uniform(k_w, (out_size, in_size), jnp.float32, -bound, bound)
    b = jax.random.uniform(k_b, (out_size,), jnp.float32, -bound, bound)

    # Deterministic graph structure: a ring, edges i <-> i+1 (mod N), no self loops.
    adj_np = np.zeros((N, N), dtype=np.float32)
    for i in range(N):
        adj_np[i, (i + 1) % N] = 1.0
        adj_np[i, (i - 1) % N] = 1.0
    adj = jnp.asarray(adj_np)

    out = gcn_forward(x, w, b, adj, depth=depth)
    out = jax.block_until_ready(out)

    ref = reference_forward(x, w, b, adj, depth=depth)
    assert out.shape == (N, out_size)
    # Loosened tolerance: Ahat / intermediate h are bf16 (f32 accumulation).
    assert np.allclose(np.asarray(out), np.asarray(ref), rtol=3e-2, atol=3e-2)

    print("KERNEL_OK")
</pallas_src>

<mosaic_0001>
module attributes {stable_mosaic.version = 11 : i64} {
  func.func @linear_kernel(%arg0: i32, %arg1: memref<128x8xf32, #tpu.memory_space<vmem>>, %arg2: memref<8x128xf32, #tpu.memory_space<vmem>>, %arg3: memref<1x128xf32, #tpu.memory_space<vmem>>, %arg4: memref<128x128xbf16, #tpu.memory_space<vmem>>) attributes {dimension_semantics = [#tpu.dimension_semantics<parallel>], iteration_bounds = array<i64: 1>, scalar_prefetch = 0 : i64, scratch_operands = 0 : i64, tpu.core_type = #tpu.core_type<tc>, window_params = [{transform_indices = @transform_0, window_bounds = array<i64: 128, 8>}, {pipeline_mode = #tpu.pipeline_mode<synchronous>, transform_indices = @transform_1, window_bounds = array<i64: 8, 128>}, {pipeline_mode = #tpu.pipeline_mode<synchronous>, transform_indices = @transform_2, window_bounds = array<i64: 1, 128>}, {transform_indices = @transform_3, window_bounds = array<i64: 128, 128>}]} {
    %c0 = arith.constant 0 : index
    %c0_0 = arith.constant 0 : index
    %0 = vector.load %arg1[%c0, %c0_0] : memref<128x8xf32, #tpu.memory_space<vmem>>, vector<128x8xf32>
    %c0_1 = arith.constant 0 : index
    %c0_2 = arith.constant 0 : index
    %1 = vector.load %arg2[%c0_1, %c0_2] : memref<8x128xf32, #tpu.memory_space<vmem>>, vector<8x128xf32>
    %cst = arith.constant dense<0.000000e+00> : vector<128x128xf32>
    %2 = tpu.matmul %0, %1, %cst {dimension_numbers = #tpu.dot_dimension_numbers<[1], [0], [0], [1], [0, 0, 1, 1], [], []>} : vector<128x8xf32>, vector<8x128xf32>, vector<128x128xf32> -> vector<128x128xf32>
    %c0_3 = arith.constant 0 : index
    %c0_4 = arith.constant 0 : index
    %3 = vector.load %arg3[%c0_3, %c0_4] : memref<1x128xf32, #tpu.memory_space<vmem>>, vector<1x128xf32>
    %4 = vector.broadcast %3 : vector<1x128xf32> to vector<128x128xf32>
    %5 = arith.addf %2, %4 : vector<128x128xf32>
    %6 = arith.truncf %5 : vector<128x128xf32> to vector<128x128xbf16>
    %c0_5 = arith.constant 0 : index
    %c0_6 = arith.constant 0 : index
    %7 = vector.load %arg4[%c0_5, %c0_6] : memref<128x128xbf16, #tpu.memory_space<vmem>>, vector<128x128xbf16>
    tpu.vector_store %arg4[%c0_5, %c0_6], %6 {strides = array<i32>} : memref<128x128xbf16, #tpu.memory_space<vmem>>, vector<128x128xbf16>,
    return
  }
  func.func @transform_0(%arg0: i32) -> (i32, i32) {
    %c0_i32 = arith.constant 0 : i32
    %c0_i32_0 = arith.constant 0 : i32
    return %arg0, %c0_i32 : i32, i32
  }
  func.func @transform_1(%arg0: i32) -> (i32, i32) {
    %c0_i32 = arith.constant 0 : i32
    %c0_i32_0 = arith.constant 0 : i32
    %c0_i32_1 = arith.constant 0 : i32
    return %c0_i32, %c0_i32_0 : i32, i32
  }
  func.func @transform_2(%arg0: i32) -> (i32, i32) {
    %c0_i32 = arith.constant 0 : i32
    %c0_i32_0 = arith.constant 0 : i32
    %c0_i32_1 = arith.constant 0 : i32
    return %c0_i32, %c0_i32_0 : i32, i32
  }
  func.func @transform_3(%arg0: i32) -> (i32, i32) {
    %c0_i32 = arith.constant 0 : i32
    %c0_i32_0 = arith.constant 0 : i32
    return %arg0, %c0_i32 : i32, i32
  }
}

</mosaic_0001>

<bundles_post_ra>
// kernel: tpu_custom_call.1
= control target key start
LH: loop header
LB: loop body
LE: loop exit
PB: predicated region body
PF: predicated region fallthrough
CT: control target
= control target key end

     0   :  { %vm39_vm0 = vcmask 64512   ;;  %s591_s0 = inlined_call_operand.vmem [shape: f32[128,8], index: 0, kind: input, shape index: {}]   ;;  %s592_s1 = inlined_call_operand.vmem [shape: f32[8,128], index: 1, kind: input, shape index: {}]   ;;  %s593_s2 = inlined_call_operand.vmem [shape: f32[1,128], index: 2, kind: input, shape index: {}]   ;;  %s594_s3 = inlined_call_operand.hbm [shape: bf16[128,128], index: 3, kind: output, shape index: {}]  }
   0x1   :  { %v31_v0 = vld [vmem:[%s592_s1] sm:$0xff]  ;;  %v16_v3 = vld [vmem:[%s591_s0 + $0x8] sm:$0xff]  ;;  %v17_v5 = vld [vmem:[%s591_s0 + $0x10] sm:$0xff] }
   0x2   :  { %v15_v1 = vld [vmem:[%s591_s0] sm:$0xff]  ;;  %442 = vmatprep.subr.mxu0 %v31_v0  ;;  %468 = vmatprep.subr.mxu1 %v31_v0  ;;  %v24_v4 = vld [vmem:[%s591_s0 + $0x48] sm:$0xff]  ;;  %v25_v6 = vld [vmem:[%s591_s0 + $0x50] sm:$0xff] }
   0x3   :  { %v23_v2 = vld [vmem:[%s591_s0 + $0x40] sm:$0xff]  ;;  %443 = vmatpush3.msra.mxu0 %v31_v0  ;;  %469 = vmatpush3.msra.mxu1 %v31_v0  ;;  %v18_v7 = vld [vmem:[%s591_s0 + $0x18] sm:$0xff] }
   0x4   :  { %444 = vmatprep.mubr.msk.f32.mxu0 %vm39_vm0, %v15_v1  ;;  %456 = vmatprep.mubr.msk.f32.mxu1 %vm39_vm0, %v23_v2  ;;  %v26_v8 = vld [vmem:[%s591_s0 + $0x58] sm:$0xff] }
   0x5   :  { %445 = vmatmul.mubr.msk.f32.vlgmr.msra.gmra.mxu0 %vm39_vm0, %v16_v3  ;;  %457 = vmatmul.mubr.msk.f32.vlgmr.msra.gmra.mxu1 %vm39_vm0, %v24_v4 }
   0x6   :  { %447 = vmatprep.mubr.msk.f32.mxu0 %vm39_vm0, %v17_v5  ;;  %459 = vmatprep.mubr.msk.f32.mxu1 %vm39_vm0, %v25_v6 }
   0x7   :  { %8 = vsyncpa [#allocation3], 0  ;;  %v19_v9 = vld [vmem:[%s591_s0 + $0x20] sm:$0xff]  ;;  %v20_v11 = vld [vmem:[%s591_s0 + $0x28] sm:$0xff] }
   0x8   :  { %v27_v10 = vld [vmem:[%s591_s0 + $0x60] sm:$0xff]  ;;  %v28_v12 = vld [vmem:[%s591_s0 + $0x68] sm:$0xff]  ;;  %v21_v13 = vld [vmem:[%s591_s0 + $0x30] sm:$0xff] }
   0x9   :  { %448 = vmatmul.mubr.msk.f32.gmra.mxu0 %vm39_vm0, %v18_v7  ;;  %460 = vmatmul.mubr.msk.f32.gmra.mxu1 %vm39_vm0, %v26_v8  ;;  %v29_v14 = vld [vmem:[%s591_s0 + $0x70] sm:$0xff]  ;;  %v22_v15 = vld [vmem:[%s591_s0 + $0x38] sm:$0xff]  ;;  %v329_v18 = vld [vmem:[%s593_s2] ss:$0 sm:$0xff] }
   0xa   :  { %450 = vmatprep.mubr.msk.f32.mxu0 %vm39_vm0, %v19_v9  ;;  %462 = vmatprep.mubr.msk.f32.mxu1 %vm39_vm0, %v27_v10  ;;  %v30_v16 = vld [vmem:[%s591_s0 + $0x78] sm:$0xff]  ;;  %s495_s0 = smov [#allocation2]  }
   0xb   :  { %s318_s2 = sshll.u32 %s495_s0, 4  ;;  %s319_s2 = int_to_ptr.vmem [resolvable:$true] %s318_s2 }
   0xc   :  { %s473_s20 = scalar_lea.vmem %s319_s2, 1024  ;;  %p478_p1 = scmp.lt.s32.totalorder %s319_s2, %s319_s2 }
   0xd   :  { %451 = vmatmul.mubr.msk.f32.gmra.mxu0 %vm39_vm0, %v20_v11  ;;  %463 = vmatmul.mubr.msk.f32.gmra.mxu1 %vm39_vm0, %v28_v12  ;;  %p474_p0 = scmp.ne.s32.totalorder %s319_s2, %s473_s20  ;;  %p479_p2 = scmp.lt.s32.totalorder %s473_s20, %s473_s20 }
   0xe   :  { %453 = vmatprep.mubr.msk.f32.mxu0 %vm39_vm0, %v21_v13  ;;  %465 = vmatprep.mubr.msk.f32.mxu1 %vm39_vm0, %v29_v14 }
   0xf   :  { %p480_p3 = por %p479_p2, %p478_p1 }
  0x11   :  { %454 = vmatmul.mubr.msk.f32.gmra.mxu0 %vm39_vm0, %v22_v15  ;;  %466 = vmatmul.mubr.msk.f32.gmra.mxu1 %vm39_vm0, %v30_v16  ;;  %p481_p4 = pnand %p480_p3, %p474_p0 }
  0xc5   :  { %v446_v17 = vpop.f32.mrf.mxu0  ;;  %v458_v19 = vpop.f32.mrf.mxu1 }
  0xc6   :  { %v160_v22 = vadd.f32 %v446_v17, %v329_v18  ;;  %v200_v23 = vadd.f32 %v458_v19, %v329_v18 }
  0xc7   :  { %v154_v20 = vpop.f32.mrf.mxu0  ;;  %v194_v21 = vpop.f32.mrf.mxu1 }
  0xc8   :  { %v155_v24 = vadd.f32 %v329_v18, %v154_v20  ;;  %v195_v25 = vadd.f32 %v329_v18, %v194_v21 }
  0xc9   :  { %v449_v26 = vpop.f32.mrf.mxu0  ;;  %v461_v27 = vpop.f32.mrf.mxu1 }
  0xca   :  { %v381_v28 = vpack.c.bf16 %v160_v22, %v155_v24  ;;  %v401_v29 = vpack.c.bf16 %v200_v23, %v195_v25  ;;  %v170_v32 = vadd.f32 %v449_v26, %v329_v18  ;;  %v210_v33 = vadd.f32 %v461_v27, %v329_v18 }
  0xcb   :  { %v164_v30 = vpop.f32.mrf.mxu0  ;;  %v204_v31 = vpop.f32.mrf.mxu1 }
  0xcc   :  { %382 = vst [vmem:[#allocation2] sm:$0xff] %v381_v28   ;;  %421 = vst [vmem:[#allocation2 + $0x20] sm:$0xff] %v401_v29   ;;  %v165_v34 = vadd.f32 %v329_v18, %v164_v30  ;;  %v205_v35 = vadd.f32 %v329_v18, %v204_v31 }
  0xcd   :  { %v452_v36 = vpop.f32.mrf.mxu0  ;;  %v464_v37 = vpop.f32.mrf.mxu1 }
  0xce   :  { %v386_v38 = vpack.c.bf16 %v170_v32, %v165_v34  ;;  %v406_v39 = vpack.c.bf16 %v210_v33, %v205_v35  ;;  %v180_v42 = vadd.f32 %v452_v36, %v329_v18  ;;  %v220_v43 = vadd.f32 %v464_v37, %v329_v18 }
  0xcf   :  { %v174_v40 = vpop.f32.mrf.mxu0  ;;  %v214_v41 = vpop.f32.mrf.mxu1 }
  0xd0   :  { %418 = vst [vmem:[#allocation2 + $0x8] sm:$0xff] %v386_v38   ;;  %422 = vst [vmem:[#allocation2 + $0x28] sm:$0xff] %v406_v39   ;;  %v175_v44 = vadd.f32 %v329_v18, %v174_v40  ;;  %v215_v45 = vadd.f32 %v329_v18, %v214_v41 }
  0xd1   :  { %v455_v46 = vpop.f32.mrf.mxu0  ;;  %v467_v47 = vpop.f32.mrf.mxu1 }
  0xd2   :  { %v391_v48 = vpack.c.bf16 %v180_v42, %v175_v44  ;;  %v411_v49 = vpack.c.bf16 %v220_v43, %v215_v45  ;;  %v190_v52 = vadd.f32 %v455_v46, %v329_v18  ;;  %v230_v53 = vadd.f32 %v467_v47, %v329_v18 }
  0xd3   :  { %v184_v50 = vpop.f32.mrf.mxu0  ;;  %v224_v51 = vpop.f32.mrf.mxu1 }
  0xd4   :  { %419 = vst [vmem:[#allocation2 + $0x10] sm:$0xff] %v391_v48   ;;  %423 = vst [vmem:[#allocation2 + $0x30] sm:$0xff] %v411_v49   ;;  %v185_v54 = vadd.f32 %v329_v18, %v184_v50  ;;  %v225_v55 = vadd.f32 %v329_v18, %v224_v51 }
  0xd6   :  { %v396_v56 = vpack.c.bf16 %v190_v52, %v185_v54  ;;  %v416_v57 = vpack.c.bf16 %v230_v53, %v225_v55 }
  0xd8   :  { %420 = vst [vmem:[#allocation2 + $0x18] sm:$0xff] %v396_v56   ;;  %424 = vst [vmem:[#allocation2 + $0x38] sm:$0xff] %v416_v57  }
  0xd9   :  { %484 = shalt.err (!%p481_p4)
}
  0xda   :  { %s496_s21 = smov 64   ;;  %s497_s1 = smov 4  }
  0xdb   :  { %324 = dma.vmem_to_hbm [thread:$0]  %s319_s2, 1024, %s594_s3, [#allocation3], %s496_s21, %s496_s21, %s497_s1  }
  0xdc   :  { %493 = dma.done.wait [#allocation3], 1024  }
  0xdd   :  { %494 = vsyncadd [#allocation3], 4294966272 }
  0xde   :  { %328 = vsyncpa [#allocation3], 1 }

</bundles_post_ra>
